<compile_context>
chip_gen: v7x
topology: tpu7x:2x2x1
jax: 0.10.0
libtpu: 0.0.40
codegen_flags: <defaults>
</compile_context>

<pallas_src>
import functools

import jax
import jax.numpy as jnp
from jax.experimental import pallas as pl
from jax.experimental.pallas import tpu as pltpu

# Small problem size (fixed for this synthetic kernel script).
N, C, H, W = 2, 8, 16, 16
R = N * C                 # 16 sublane rows, r = n*C + c
L = H * W                 # 256 lanes per row, p = h*W + w
NPIX = N * H * W          # 512 elements per channel for BN statistics
EPS = 1e-5

VMEM = pl.BlockSpec(memory_space=pltpu.MemorySpace.VMEM)
SMEM = pl.BlockSpec(memory_space=pltpu.MemorySpace.SMEM)


@functools.lru_cache(maxsize=None)
def _roll_like_jnp():
    """True iff pltpu.roll matches jnp.roll semantics (y[j] = x[(j-s) % n]).

    Resolved eagerly exactly once; ensure_compile_time_eval makes it safe even
    if the first caller is being jit-traced."""
    def k(x_r, o_r):
        o_r[...] = pltpu.roll(x_r[...], 1, axis=1)
    with jax.ensure_compile_time_eval():
        v = jnp.tile(jnp.arange(128, dtype=jnp.float32)[None, :], (8, 1))
        r = pl.pallas_call(
            k, out_shape=jax.ShapeDtypeStruct((8, 128), jnp.float32),
            in_specs=[VMEM], out_specs=VMEM)(v)
        return bool(r[0, 1] == 0.0)


# ----------------------------------------------------------------------------
# Fused Pallas kernel
# ----------------------------------------------------------------------------
def mixed_op_kernel(w_ref, x_ref,
                    dw3a_ref, dw3b_ref, dw5a_ref, dw5b_ref, dwd3_ref, dwd5_ref,
                    pw_ref, g_ref, b_ref, out_ref, *, roll_like_jnp):
    """Fully fused MixedOp forward on a (N*C, H*W) = (16, 256) view."""
    x = x_ref[...]                                   # (R, L)
    relu_x = jnp.maximum(x, 0.0)                     # shared by all conv branches

    # Per-lane (h, w) coordinates of the flattened position p = h*W + w.
    pos = jax.lax.broadcasted_iota(jnp.int32, (R, L), 1)
    wi = pos % W
    hi = pos // W

    def roll_lanes(v, off):
        """Cyclic lane shift so position p reads value at p + off (per row)."""
        amt = (-off) % L if roll_like_jnp else off % L
        return pltpu.roll(v, amt, axis=1)            # XLU lane rotation

    def h_mask(dy):                                  # single-sided compare
        if dy == 0:
            return None
        return (hi >= -dy) if dy < 0 else (hi < H - dy)

    def w_mask(dx):
        if dx == 0:
            return None
        return (wi >= -dx) if dx < 0 else (wi < W - dx)

    def and_mask(a, b):
        if a is None:
            return b
        if b is None:
            return a
        return jnp.logical_and(a, b)

    # ---- one-pass train-mode BatchNorm (per channel over N, H, W) ----------
    inv_npix = jnp.float32(1.0 / NPIX)

    def nswap(a):
        """Rows (n, c) -> (1-n, c): aligned 8-row slab swap (cheap)."""
        return jnp.concatenate([a[C:, :], a[:C, :]], axis=0)

    def bn(v, idx=None):
        s1 = jnp.sum(v, axis=1, keepdims=True)       # (R, 1) per-row sums
        s2 = jnp.sum(v * v, axis=1, keepdims=True)   # issued in parallel
        s1 = s1 + nswap(s1)                          # combine the two images
        s2 = s2 + nswap(s2)
        mu = s1 * inv_npix
        var = s2 * inv_npix - mu * mu                # biased variance
        y = (v - mu) * jax.lax.rsqrt(var + EPS)
        if idx is not None:                          # affine BN
            y = y * g_ref[:, idx:idx + 1] + b_ref[:, idx:idx + 1]
        return y

    # ---- 1x1 conv on the MXU (block-diagonal over the batch rows) ----------
    def pointwise(v, idx):
        return jnp.dot(pw_ref[idx], v, preferred_element_type=jnp.float32)

    # ---- generic depthwise conv (used for the second sep-conv stages) ------
    def dwconv(v, dw_ref_, K, dil):
        half = (K - 1) // 2
        parts = [None, None]                         # 2 partial accumulators (ILP)
        t = 0
        for ky in range(K):
            dy = (ky - half) * dil
            hm = h_mask(dy)
            for kx in range(K):
                dx = (kx - half) * dil
                m = and_mask(hm, w_mask(dx))
                off = dy * W + dx
                sv = v if off == 0 else roll_lanes(v, off)
                if m is not None:
                    sv = jnp.where(m, sv, 0.0)
                term = sv * dw_ref_[:, t:t + 1]
                s = t & 1
                parts[s] = term if parts[s] is None else parts[s] + term
                t += 1
        return parts[0] + parts[1]

    # ---- stage 1: de-duplicated taps shared by sep3/sep5/dil3/dil5 + pools --
    def taps(K, dil):
        half = (K - 1) // 2
        return {((ky - half) * dil, (kx - half) * dil): ky * K + kx
                for ky in range(K) for kx in range(K)}

    stage1 = (('s3', taps(3, 1), dw3a_ref),
              ('s5', taps(5, 1), dw5a_ref),
              ('d3', taps(3, 2), dwd3_ref),
              ('d5', taps(5, 2), dwd5_ref))
    union = {}                                       # (dy,dx) -> [(name, t, ref)]
    for name, tmap, ref in stage1:
        for off, t in tmap.items():
            union.setdefault(off, []).append((name, t, ref))

    acc = {'s3': None, 's5': None, 'd3': None, 'd5': None}
    mx = x                                           # pool center tap (always valid)
    sm = x

    for dy in sorted({o[0] for o in union}):
        hm = h_mask(dy)                              # reused across this dy group
        for dx in sorted({o[1] for o in union if o[0] == dy}):
            m = and_mask(hm, w_mask(dx))
            off = dy * W + dx
            is_pool = (abs(dy) <= 1 and abs(dx) <= 1 and off != 0)
            if off == 0:
                sx, srelu = x, relu_x
            elif is_pool:
                sx = roll_lanes(x, off)              # one roll shared with pools
                srelu = jnp.maximum(sx, 0.0)         # relu commutes with roll
            else:
                sx = None
                srelu = roll_lanes(relu_x, off)
            rv = srelu if m is None else jnp.where(m, srelu, 0.0)
            for name, t, ref in union[(dy, dx)]:
                term = rv * ref[:, t:t + 1]
                acc[name] = term if acc[name] is None else acc[name] + term
            if is_pool:
                mx = jnp.maximum(mx, jnp.where(m, sx, -jnp.inf))
                sm = sm + jnp.where(m, sx, 0.0)

    # avg-pool divisor is pure geometry (count_include_pad=False): {4, 6, 9}.
    third = jnp.float32(1.0 / 3.0)
    inv_h = jnp.where((hi == 0) | (hi == H - 1), jnp.float32(0.5), third)
    inv_w = jnp.where((wi == 0) | (wi == W - 1), jnp.float32(0.5), third)
    avg = sm * (inv_h * inv_w)

    # ---- architecture-weighted mix, accumulated as each branch finishes ----
    # (weights[0] scales exact zeros -> omitted; parameter index order:
    #  0 sep3.1, 1 sep3.2, 2 sep5.1, 3 sep5.2, 4 dil3, 5 dil5)
    out = w_ref[3] * x                               # skip_connect
    out = out + w_ref[1] * bn(mx)                    # max_pool_3x3 + BN(affine=False)
    out = out + w_ref[2] * bn(avg)                   # avg_pool_3x3 + BN(affine=False)
    out = out + w_ref[6] * bn(pointwise(acc['d3'], 4), 4)      # dil_conv_3x3
    out = out + w_ref[7] * bn(pointwise(acc['d5'], 5), 5)      # dil_conv_5x5

    def sep_stage2(a, dw2_ref, idx1, idx2, K):
        y = jnp.maximum(bn(pointwise(a, idx1), idx1), 0.0)
        return bn(pointwise(dwconv(y, dw2_ref, K, 1), idx2), idx2)

    out = out + w_ref[4] * sep_stage2(acc['s3'], dw3b_ref, 0, 1, 3)   # sep_conv_3x3
    out = out + w_ref[5] * sep_stage2(acc['s5'], dw5b_ref, 2, 3, 5)   # sep_conv_5x5

    out_ref[...] = out                               # lane-dense (16, 256) store


# ----------------------------------------------------------------------------
# Host-side, one-time parameter packing (keep OUTSIDE jit-traced code paths)
# ----------------------------------------------------------------------------
def pack_params(params):
    def dw_pack(w_kkc):                              # (K,K,C) -> (N*C, K*K)
        kk = w_kkc.shape[0] * w_kkc.shape[1]
        w = jnp.transpose(w_kkc.reshape(kk, C), (1, 0))
        return jnp.tile(w, (N, 1)).astype(jnp.float32)

    def pw_pack(w_oi):                               # (C,C) -> (N*C, N*C) block-diag
        return jnp.kron(jnp.eye(N, dtype=jnp.float32), w_oi.astype(jnp.float32))

    def vec_pack(v):                                 # (C,) -> (N*C,)
        return jnp.tile(v.astype(jnp.float32), (N,))

    s3, s5, d3, d5 = params['sep3'], params['sep5'], params['dil3'], params['dil5']
    return dict(
        dw3a=dw_pack(s3['dw1']), dw3b=dw_pack(s3['dw2']),
        dw5a=dw_pack(s5['dw1']), dw5b=dw_pack(s5['dw2']),
        dwd3=dw_pack(d3['dw']), dwd5=dw_pack(d5['dw']),
        pw=jnp.stack([pw_pack(s3['pw1']), pw_pack(s3['pw2']),
                      pw_pack(s5['pw1']), pw_pack(s5['pw2']),
                      pw_pack(d3['pw']), pw_pack(d5['pw'])]),            # (6,R,R)
        g=jnp.stack([vec_pack(s3['g1']), vec_pack(s3['g2']),
                     vec_pack(s5['g1']), vec_pack(s5['g2']),
                     vec_pack(d3['g']), vec_pack(d5['g'])], axis=1),     # (R,6)
        b=jnp.stack([vec_pack(s3['b1']), vec_pack(s3['b2']),
                     vec_pack(s5['b1']), vec_pack(s5['b2']),
                     vec_pack(d3['b']), vec_pack(d5['b'])], axis=1))     # (R,6)


def mixed_op(x_nchw, weights, packed):
    """MixedOp forward: NCHW in/out; one fused Pallas kernel.

    The NCHW <-> (N*C, H*W) relayouts are pure reshapes (no transpose/copy)."""
    xr = x_nchw.astype(jnp.float32).reshape(R, L)
    kern = functools.partial(mixed_op_kernel, roll_like_jnp=_roll_like_jnp())
    out = pl.pallas_call(
        kern,
        out_shape=jax.ShapeDtypeStruct((R, L), jnp.float32),
        in_specs=[SMEM] + [VMEM] * 10,
        out_specs=VMEM,
    )(weights.astype(jnp.float32), xr,
      packed['dw3a'], packed['dw3b'], packed['dw5a'], packed['dw5b'],
      packed['dwd3'], packed['dwd5'], packed['pw'], packed['g'], packed['b'])
    return out.reshape(N, C, H, W)


# ----------------------------------------------------------------------------
# Pure-JAX reference (NCHW, mirrors the PyTorch module in train() mode)
# ----------------------------------------------------------------------------
def ref_mixed_op(x, weights, params):
    def bn(z, g=None, b=None):
        mu = jnp.mean(z, axis=(0, 2, 3), keepdims=True)
        var = jnp.mean((z - mu) ** 2, axis=(0, 2, 3), keepdims=True)
        y = (z - mu) / jnp.sqrt(var + EPS)
        if g is not None:
            y = y * g[None, :, None, None] + b[None, :, None, None]
        return y

    def dw(z, w_kkc, dil, pad):
        w = jnp.transpose(w_kkc, (2, 0, 1))[:, None, :, :]   # (C,1,K,K)
        return jax.lax.conv_general_dilated(
            z, w, (1, 1), [(pad, pad), (pad, pad)], rhs_dilation=(dil, dil),
            dimension_numbers=('NCHW', 'OIHW', 'NCHW'), feature_group_count=C)

    def pw(z, w_oi):
        return jax.lax.conv_general_dilated(
            z, w_oi[:, :, None, None], (1, 1), 'VALID',
            dimension_numbers=('NCHW', 'OIHW', 'NCHW'))

    def sep(z, p, K):
        pad = (K - 1) // 2
        y = bn(pw(dw(jax.nn.relu(z), p['dw1'], 1, pad), p['pw1']), p['g1'], p['b1'])
        return bn(pw(dw(jax.nn.relu(y), p['dw2'], 1, pad), p['pw2']), p['g2'], p['b2'])

    def dil(z, p, K):
        return bn(pw(dw(jax.nn.relu(z), p['dw'], 2, K - 1), p['pw']), p['g'], p['b'])

    pad4 = [(0, 0), (0, 0), (1, 1), (1, 1)]
    mx = jax.lax.reduce_window(x, -jnp.inf, jax.lax.max,
                               (1, 1, 3, 3), (1, 1, 1, 1), pad4)
    sm = jax.lax.reduce_window(x, 0.0, jax.lax.add,
                               (1, 1, 3, 3), (1, 1, 1, 1), pad4)
    cnt = jax.lax.reduce_window(jnp.ones_like(x), 0.0, jax.lax.add,
                                (1, 1, 3, 3), (1, 1, 1, 1), pad4)
    branches = [
        jnp.zeros_like(x),          # 'none'
        bn(mx),                     # max_pool_3x3 + BN(affine=False)
        bn(sm / cnt),               # avg_pool_3x3 (count_include_pad=False) + BN
        x,                          # skip_connect
        sep(x, params['sep3'], 3),
        sep(x, params['sep5'], 5),
        dil(x, params['dil3'], 3),
        dil(x, params['dil5'], 5),
    ]
    out = jnp.zeros_like(x)
    for w_i, b_i in zip(weights, branches):
        out = out + w_i * b_i
    return out


# ----------------------------------------------------------------------------
if __name__ == "__main__":
    _roll_like_jnp()   # resolve the pltpu.roll convention eagerly, once

    key = jax.random.PRNGKey(0)
    kx, ka, *kp = jax.random.split(key, 14)

    def nrm(k, shape):
        return (0.1 * jax.random.normal(k, shape)).astype(jnp.float32)

    ones = jnp.ones((C,), jnp.float32)
    zeros = jnp.zeros((C,), jnp.float32)
    params = {
        'sep3': dict(dw1=nrm(kp[0], (3, 3, C)), pw1=nrm(kp[1], (C, C)),
                     g1=ones, b1=zeros,
                     dw2=nrm(kp[2], (3, 3, C)), pw2=nrm(kp[3], (C, C)),
                     g2=ones, b2=zeros),
        'sep5': dict(dw1=nrm(kp[4], (5, 5, C)), pw1=nrm(kp[5], (C, C)),
                     g1=ones, b1=zeros,
                     dw2=nrm(kp[6], (5, 5, C)), pw2=nrm(kp[7], (C, C)),
                     g2=ones, b2=zeros),
        'dil3': dict(dw=nrm(kp[8], (3, 3, C)), pw=nrm(kp[9], (C, C)),
                     g=ones, b=zeros),
        'dil5': dict(dw=nrm(kp[10], (5, 5, C)), pw=nrm(kp[11], (C, C)),
                     g=ones, b=zeros),
    }
    packed = pack_params(params)            # host-side one-time packing

    x = jax.random.normal(kx, (N, C, H, W), jnp.float32)             # NCHW input
    weights = jax.nn.softmax(jax.random.normal(ka, (8,))).astype(jnp.float32)

    fwd = jax.jit(lambda xx, ww: mixed_op(xx, ww, packed))
    out = jax.block_until_ready(fwd(x, weights))
    ref = jax.block_until_ready(ref_mixed_op(x, weights, params))

    assert out.shape == (N, C, H, W)
    assert bool(jnp.all(jnp.isfinite(out)))
    assert bool(jnp.allclose(out, ref, atol=1e-3, rtol=1e-3)), \
        float(jnp.max(jnp.abs(out - ref)))
    print("KERNEL_OK")
</pallas_src>

<mosaic_0001>
module attributes {stable_mosaic.version = 11 : i64} {
  func.func @k(%arg0: memref<8x128xf32, #tpu.memory_space<vmem>>, %arg1: memref<8x128xf32, #tpu.memory_space<vmem>>) attributes {dimension_semantics = [], scalar_prefetch = 0 : i64, scratch_operands = 0 : i64, tpu.core_type = #tpu.core_type<tc>} {
    %c0 = arith.constant 0 : index
    %c0_0 = arith.constant 0 : index
    %0 = vector.load %arg0[%c0, %c0_0] : memref<8x128xf32, #tpu.memory_space<vmem>>, vector<8x128xf32>
    %c1_i32 = arith.constant 1 : i32
    %1 = tpu.dynamic_rotate %0 by %c1_i32 dim 1 : vector<8x128xf32>, i32 -> vector<8x128xf32>
    %c0_1 = arith.constant 0 : index
    %c0_2 = arith.constant 0 : index
    %2 = vector.load %arg1[%c0_1, %c0_2] : memref<8x128xf32, #tpu.memory_space<vmem>>, vector<8x128xf32>
    tpu.vector_store %arg1[%c0_1, %c0_2], %1 {strides = array<i32>} : memref<8x128xf32, #tpu.memory_space<vmem>>, vector<8x128xf32>,
    return
  }
}

</mosaic_0001>

<bundles_post_ra>
// kernel: tpu_custom_call.1
= control target key start
LH: loop header
LB: loop body
LE: loop exit
PB: predicated region body
PF: predicated region fallthrough
CT: control target
= control target key end

     0   :  { %6 = vsyncpa [#allocation3], 0  ;;  %s128_s0 = inlined_call_operand.hbm [shape: f32[8,128], index: 0, kind: input, shape index: {}]   ;;  %s129_s1 = inlined_call_operand.hbm [shape: f32[8,128], index: 1, kind: output, shape index: {}]  }
   0x1   :  { %7 = vsyncpa [#allocation4], 0  ;;  %s91_s6 = smov [#allocation2]   ;;  %s43_s10 = scalar_lea.hbm %s128_s0, 128 }
   0x2   :  { %s14_s7 = sshll.u32 %s91_s6, 4  ;;  %p44_p0 = scmp.ne.s32.totalorder %s128_s0, %s43_s10  ;;  %s15_s7 = int_to_ptr.vmem [resolvable:$true] %s14_s7 }
   0x3   :  { %p47_p1 = scmp.lt.u32.totalorder %s43_s10, %s128_s0 }
   0x5   :  { %p49_p2 = pnand %p47_p1, %p44_p0 }
   0x7   :  { %52 = shalt.err (!%p49_p2)
}
   0x8   :  { %s53_s15 = scalar_lea.vmem %s15_s7, 128  ;;  %p58_p4 = scmp.lt.s32.totalorder %s15_s7, %s15_s7 }
   0x9   :  { %p54_p3 = scmp.ne.s32.totalorder %s15_s7, %s53_s15  ;;  %p59_p5 = scmp.lt.s32.totalorder %s53_s15, %s53_s15 }
   0xb   :  { %p60_p6 = por %p59_p5, %p58_p4 }
   0xd   :  { %p61_p7 = pnand %p60_p6, %p54_p3 }
   0xf   :  { %64 = shalt.err (!%p61_p7)
}
  0x10   :  { %17 = dma.hbm_to_vmem [thread:$0]  %s128_s0, 128, %s15_s7, [#allocation3]  }
  0x11   :  { %87 = dma.done.wait [#allocation3], 128  }
  0x12   :  { %88 = vsyncadd [#allocation3], 4294967168  ;;  %v21_v0 = vld [vmem:[#allocation2] sm:$0xff]  ;;  %s92_s18 = smov 1   ;;  %s93_s19 = smov [#allocation5]  }
  0x13   :  { %22 = vrot.lane.b32.xlu0 %v21_v0, %s92_s18  ;;  %s31_s20 = sshll.u32 %s93_s19, 4  ;;  %s32_s20 = int_to_ptr.vmem [resolvable:$true] %s31_s20 }
  0x14   :  { %s65_s21 = scalar_lea.vmem %s32_s20, 128  ;;  %p70_p9 = scmp.lt.s32.totalorder %s32_s20, %s32_s20 }
  0x15   :  { %p66_p8 = scmp.ne.s32.totalorder %s32_s20, %s65_s21  ;;  %p71_p10 = scmp.lt.s32.totalorder %s65_s21, %s65_s21 }
  0x17   :  { %p72_p11 = por %p71_p10, %p70_p9 }
  0x19   :  { %p73_p12 = pnand %p72_p11, %p66_p8 }
  0x85   :  { %v23_v1 = vpop.permute.xlu0 %22 }
  0x86   :  { %24 = vst [vmem:[#allocation5] sm:$0xff] %v23_v1 }
  0x87   :  { %76 = shalt.err (!%p73_p12)
}
  0x88   :  { %s77_s0 = scalar_lea.hbm %s129_s1, 128 }
  0x89   :  { %p78_p13 = scmp.ne.s32.totalorder %s129_s1, %s77_s0  ;;  %p81_p0 = scmp.lt.u32.totalorder %s77_s0, %s129_s1 }
  0x8b   :  { %p83_p1 = pnand %p81_p0, %p78_p13 }
  0x8d   :  { %86 = shalt.err (!%p83_p1)
}
  0x8e   :  { %34 = dma.vmem_to_hbm [thread:$0]  %s32_s20, 128, %s129_s1, [#allocation4]  }
  0x8f   :  { %89 = dma.done.wait [#allocation4], 128  }
  0x90   :  { %90 = vsyncadd [#allocation4], 4294967168 }
  0x91   :  { %38 = vsyncpa [#allocation3], 1 }
  0x92   :  { %39 = vsyncpa [#allocation4], 1 }

</bundles_post_ra>
